<compile_context>
chip_gen: v6e
topology: v6e:2x2x1
jax: 0.10.0
libtpu: 0.0.40
codegen_flags: <defaults>
</compile_context>

<pallas_src>
import functools
import math

import jax
import jax.numpy as jnp
from jax.experimental import pallas as pl
from jax.experimental.pallas import tpu as pltpu


def _round_up(x, m):
    return ((x + m - 1) // m) * m


def _physical_vmem_bytes():
    """Best-effort per-core VMEM capacity query; conservative fallback."""
    try:
        info = pltpu.get_tpu_info()
        return int(getattr(info, "vmem_capacity_bytes", 64 << 20))
    except Exception:
        return 64 << 20  # v7x per-TensorCore VMEM (smallest current target)


def _choose_tile_m(n_rows):
    """Row tile: large for big N (amortize ~0.35us/grid-step, full MXU M),
    >= 2 tiles when N >= 32 (so 'parallel' can shard across 2 TCs on v7x),
    and always a multiple of 16 (bf16 sublane packing)."""
    if n_rows >= 1024:
        return 512
    if n_rows >= 512:
        return 256
    if n_rows >= 32:
        return _round_up(pl.cdiv(n_rows, 2), 16)
    return _round_up(max(n_rows, 1), 16)


def _mlp_fused_kernel(x_ref, *refs, num_layers, compute_dtype):
    """Whole layer stack on one row tile. refs = (w0,b0,...,wL-1,bL-1, out)."""
    o_ref = refs[-1]
    wb = refs[:-1]
    h = x_ref[...]                                     # bf16 row tile
    for l in range(num_layers):
        y = jnp.dot(h, wb[2 * l][...], preferred_element_type=jnp.float32)
        y = y + wb[2 * l + 1][...]                     # bias add in f32
        if l != num_layers - 1:
            # ReLU in f32 (dropout = identity in eval), then carry activation
            # in bf16: halves the live working set between layers.
            h = jnp.maximum(y, 0.0).astype(compute_dtype)
        else:
            h = y
    o_ref[...] = h.astype(o_ref.dtype)


def _linear_kernel(x_ref, w_ref, b_ref, o_ref, *, apply_relu):
    """One Linear (+ optional ReLU) on a (row-tile, out-col-tile) block."""
    y = jnp.dot(x_ref[...], w_ref[...], preferred_element_type=jnp.float32)
    y = y + b_ref[...]
    if apply_relu:
        y = jnp.maximum(y, 0.0)
    o_ref[...] = y.astype(o_ref.dtype)


class MLPPallas:
    """Pallas-TPU port of the PyTorch MLP module (forward pass, eval mode)."""

    def __init__(self, num_layers, input_dim, hidden_dim, output_dim,
                 dropout_ratio=0.0, norm_type="none",
                 compute_dtype=jnp.bfloat16, key=jax.random.PRNGKey(0)):
        assert norm_type == "none", "only norm_type='none' is implemented"
        self.num_layers = num_layers
        self.input_dim = input_dim
        self.output_dim = output_dim
        self.dropout_ratio = dropout_ratio      # identity at eval time
        self.compute_dtype = compute_dtype

        if num_layers == 1:
            dims = [(input_dim, output_dim)]
        else:
            dims = ([(input_dim, hidden_dim)]
                    + [(hidden_dim, hidden_dim)] * (num_layers - 2)
                    + [(hidden_dim, output_dim)])
        self.dims = dims

        # Deterministic init mimicking nn.Linear default: U(-1/sqrt(fan_in), +).
        self.params = []          # unpadded f32 masters (reference)
        self.padded_params = []   # lane-padded, weights in compute_dtype
        for (fan_in, fan_out) in dims:
            key, wk, bk = jax.random.split(key, 3)
            bound = 1.0 / math.sqrt(fan_in)
            w = jax.random.uniform(wk, (fan_in, fan_out), jnp.float32,
                                   minval=-bound, maxval=bound)
            b = jax.random.uniform(bk, (1, fan_out), jnp.float32,
                                   minval=-bound, maxval=bound)
            self.params.append((w, b))

            din_p, dout_p = _round_up(fan_in, 128), _round_up(fan_out, 128)
            w_p = jnp.zeros((din_p, dout_p), compute_dtype)
            w_p = w_p.at[:fan_in, :fan_out].set(w.astype(compute_dtype))
            b_p = jnp.zeros((1, dout_p), jnp.float32)
            b_p = b_p.at[:, :fan_out].set(b)
            self.padded_params.append((w_p, b_p))

    # ------------------------------------------------------------------ VMEM
    def _fused_vmem_bytes(self, tile_m):
        """Estimated resident VMEM for the fused kernel at a given row tile."""
        c_item = jnp.dtype(self.compute_dtype).itemsize
        din_p = self.padded_params[0][0].shape[0]
        dout_p = self.padded_params[-1][0].shape[1]
        params_bytes = sum(w.size * w.dtype.itemsize + b.size * b.dtype.itemsize
                           for (w, b) in self.padded_params)  # single-buffered
        x_tiles = 2 * tile_m * din_p * c_item                 # double-buffered in
        o_tiles = 2 * tile_m * dout_p * 4                     # double-buffered f32 out
        max_dim = max(max(w.shape) for (w, _) in self.padded_params)
        act = tile_m * max_dim * (4 + c_item)                 # live f32 + bf16 act
        return params_bytes + x_tiles + o_tiles + act

    # --------------------------------------------------------------- forward
    def __call__(self, feats, force_per_layer=False):
        N, Din = feats.shape
        assert Din == self.input_dim
        cdtype = self.compute_dtype
        din_p = self.padded_params[0][0].shape[0]

        # Cast to the MXU dtype (halves kernel input DMA) and pad only the
        # feature dim; row remainder handled by a partial last grid tile.
        x = feats.astype(cdtype)
        if din_p != Din:
            x = jnp.pad(x, ((0, 0), (0, din_p - Din)))

        vmem_budget = int(_physical_vmem_bytes() * 0.85)
        tile_m = _choose_tile_m(N)

        use_fused = not force_per_layer
        if use_fused:
            while tile_m > 16 and self._fused_vmem_bytes(tile_m) > vmem_budget:
                tile_m = max(16, _round_up(tile_m // 2, 16))
            if self._fused_vmem_bytes(tile_m) > vmem_budget:
                use_fused = False   # resident weights don't fit -> stream them

        if use_fused:
            out = self._fused_forward(x, N, tile_m, vmem_budget)
        else:
            out = self._per_layer_forward(x, N, vmem_budget)
        return out[:, :self.output_dim]

    def _fused_forward(self, x, N, tile_m, vmem_budget):
        cdtype = self.compute_dtype
        din_p = self.padded_params[0][0].shape[0]
        dout_p = self.padded_params[-1][0].shape[1]
        grid = (pl.cdiv(N, tile_m),)

        in_specs = [pl.BlockSpec((tile_m, din_p), lambda i: (i, 0))]
        flat_params = []
        for (w_p, b_p) in self.padded_params:
            # Grid-invariant blocks: single-buffer (halves resident VMEM).
            in_specs.append(pl.BlockSpec(w_p.shape, lambda i: (0, 0),
                                         pipeline_mode=pl.Buffered(1)))
            in_specs.append(pl.BlockSpec(b_p.shape, lambda i: (0, 0),
                                         pipeline_mode=pl.Buffered(1)))
            flat_params.extend([w_p, b_p])
        out_specs = pl.BlockSpec((tile_m, dout_p), lambda i: (i, 0))

        flops = sum(2 * N * w.shape[0] * w.shape[1]
                    for (w, _) in self.padded_params)
        bytes_accessed = (x.size * x.dtype.itemsize
                          + sum(p.size * p.dtype.itemsize for p in flat_params)
                          + N * dout_p * 4)
        cost = pl.CostEstimate(flops=flops, transcendentals=0,
                               bytes_accessed=bytes_accessed)

        vmem_limit = min(
            max(int(self._fused_vmem_bytes(tile_m) * 1.25) + (2 << 20),
                32 << 20),
            vmem_budget)

        kernel = functools.partial(_mlp_fused_kernel,
                                   num_layers=self.num_layers,
                                   compute_dtype=cdtype)
        return pl.pallas_call(
            kernel,
            out_shape=jax.ShapeDtypeStruct((N, dout_p), jnp.float32),
            grid=grid,
            in_specs=in_specs,
            out_specs=out_specs,
            compiler_params=pltpu.CompilerParams(
                dimension_semantics=("parallel",),
                vmem_limit_bytes=vmem_limit),
            cost_estimate=cost,
        )(x, *flat_params)

    def _per_layer_forward(self, x, N, vmem_budget):
        """Fallback when resident weights exceed the VMEM budget: one tiled
        pallas_call per layer, streaming weight column tiles from HBM.
        Intermediate activations round-trip HBM in compute_dtype."""
        cdtype = self.compute_dtype
        c_item = jnp.dtype(cdtype).itemsize
        tile_m = _choose_tile_m(N)
        h = x
        for l, (w_p, b_p) in enumerate(self.padded_params):
            k_p, dout_l = w_p.shape
            is_last = (l == self.num_layers - 1)
            out_dtype = jnp.float32 if is_last else cdtype
            tile_n = next(t for t in (512, 256, 128) if dout_l % t == 0)
            grid = (pl.cdiv(N, tile_m), dout_l // tile_n)

            need = (2 * tile_m * k_p * c_item                 # x tiles
                    + 2 * k_p * tile_n * c_item               # weight tiles
                    + 2 * 8 * tile_n * 4                      # bias tiles
                    + 2 * tile_m * tile_n * jnp.dtype(out_dtype).itemsize
                    + tile_m * tile_n * 4)                    # f32 accumulator
            vmem_limit = min(max(int(need * 1.5), 32 << 20), vmem_budget)

            flops = 2 * N * k_p * dout_l
            bytes_accessed = (N * k_p * c_item
                              + w_p.size * w_p.dtype.itemsize * pl.cdiv(N, tile_m)
                              + N * dout_l * jnp.dtype(out_dtype).itemsize)
            cost = pl.CostEstimate(flops=flops, transcendentals=0,
                                   bytes_accessed=bytes_accessed)

            kernel = functools.partial(_linear_kernel, apply_relu=not is_last)
            h = pl.pallas_call(
                kernel,
                out_shape=jax.ShapeDtypeStruct((N, dout_l), out_dtype),
                grid=grid,
                in_specs=[
                    pl.BlockSpec((tile_m, k_p), lambda i, j: (i, 0)),
                    pl.BlockSpec((k_p, tile_n), lambda i, j: (0, j)),
                    pl.BlockSpec((1, tile_n), lambda i, j: (0, j)),
                ],
                out_specs=pl.BlockSpec((tile_m, tile_n), lambda i, j: (i, j)),
                compiler_params=pltpu.CompilerParams(
                    dimension_semantics=("parallel", "parallel"),
                    vmem_limit_bytes=vmem_limit),
                cost_estimate=cost,
            )(h, w_p, b_p)
        return h


def _reference_forward(model, feats):
    """Pure-JAX reference mirroring the kernel's dtype sequence."""
    cdtype = model.compute_dtype
    h = feats.astype(cdtype)
    for l, (w, b) in enumerate(model.params):
        y = jnp.dot(h, w.astype(cdtype),
                    preferred_element_type=jnp.float32) + b
        if l != model.num_layers - 1:
            h = jnp.maximum(y, 0.0).astype(cdtype)
        else:
            h = y
    return h


if __name__ == "__main__":
    key = jax.random.PRNGKey(0)
    k_x, k_x2, k_p = jax.random.split(key, 3)

    N, input_dim, hidden_dim, output_dim = 8, 16, 32, 8
    num_layers = 3

    model = MLPPallas(num_layers, input_dim, hidden_dim, output_dim,
                      dropout_ratio=0.5, norm_type="none", key=k_p)

    # Small single-tile case (tile larger than N -> partial block).
    x = jax.random.normal(k_x, (N, input_dim), dtype=jnp.float32)
    out = jax.block_until_ready(model(x))
    ref = _reference_forward(model, x)
    assert out.shape == (N, output_dim)
    assert jnp.allclose(out, ref, atol=2e-2, rtol=2e-2)

    # Multi-tile case: grid > 1, non-divisible row count (partial last tile),
    # parallel row axis for megacore sharding.
    N2 = 300
    x2 = jax.random.normal(k_x2, (N2, input_dim), dtype=jnp.float32)
    out2 = jax.block_until_ready(model(x2))
    ref2 = _reference_forward(model, x2)
    assert out2.shape == (N2, output_dim)
    assert jnp.allclose(out2, ref2, atol=2e-2, rtol=2e-2)

    # Weight-streaming fallback path (used when resident weights exceed VMEM).
    out3 = jax.block_until_ready(model(x2, force_per_layer=True))
    assert out3.shape == (N2, output_dim)
    assert jnp.allclose(out3, ref2, atol=2e-2, rtol=2e-2)

    print("KERNEL_OK")
</pallas_src>

<mosaic_0001>
module attributes {stable_mosaic.version = 11 : i64} {
  func.func @_mlp_fused_kernel(%arg0: i32, %arg1: memref<16x128xbf16, #tpu.memory_space<vmem>>, %arg2: memref<128x128xbf16, #tpu.memory_space<vmem>>, %arg3: memref<1x128xf32, #tpu.memory_space<vmem>>, %arg4: memref<128x128xbf16, #tpu.memory_space<vmem>>, %arg5: memref<1x128xf32, #tpu.memory_space<vmem>>, %arg6: memref<128x128xbf16, #tpu.memory_space<vmem>>, %arg7: memref<1x128xf32, #tpu.memory_space<vmem>>, %arg8: memref<16x128xf32, #tpu.memory_space<vmem>>) attributes {dimension_semantics = [#tpu.dimension_semantics<parallel>], iteration_bounds = array<i64: 1>, scalar_prefetch = 0 : i64, scratch_operands = 0 : i64, tpu.core_type = #tpu.core_type<tc>, window_params = [{transform_indices = @transform_0, window_bounds = array<i64: 16, 128>}, {pipeline_mode = #tpu.pipeline_mode<synchronous>, transform_indices = @transform_1, window_bounds = array<i64: 128, 128>}, {pipeline_mode = #tpu.pipeline_mode<synchronous>, transform_indices = @transform_2, window_bounds = array<i64: 1, 128>}, {pipeline_mode = #tpu.pipeline_mode<synchronous>, transform_indices = @transform_3, window_bounds = array<i64: 128, 128>}, {pipeline_mode = #tpu.pipeline_mode<synchronous>, transform_indices = @transform_4, window_bounds = array<i64: 1, 128>}, {pipeline_mode = #tpu.pipeline_mode<synchronous>, transform_indices = @transform_5, window_bounds = array<i64: 128, 128>}, {pipeline_mode = #tpu.pipeline_mode<synchronous>, transform_indices = @transform_6, window_bounds = array<i64: 1, 128>}, {transform_indices = @transform_7, window_bounds = array<i64: 16, 128>}]} {
    %c0 = arith.constant 0 : index
    %c0_0 = arith.constant 0 : index
    %0 = vector.load %arg1[%c0, %c0_0] : memref<16x128xbf16, #tpu.memory_space<vmem>>, vector<16x128xbf16>
    %c0_1 = arith.constant 0 : index
    %c0_2 = arith.constant 0 : index
    %1 = vector.load %arg2[%c0_1, %c0_2] : memref<128x128xbf16, #tpu.memory_space<vmem>>, vector<128x128xbf16>
    %cst = arith.constant dense<0.000000e+00> : vector<16x128xf32>
    %2 = tpu.matmul %0, %1, %cst {dimension_numbers = #tpu.dot_dimension_numbers<[1], [0], [0], [1], [0, 0, 1, 1], [], []>} : vector<16x128xbf16>, vector<128x128xbf16>, vector<16x128xf32> -> vector<16x128xf32>
    %c0_3 = arith.constant 0 : index
    %c0_4 = arith.constant 0 : index
    %3 = vector.load %arg3[%c0_3, %c0_4] : memref<1x128xf32, #tpu.memory_space<vmem>>, vector<1x128xf32>
    %4 = vector.broadcast %3 : vector<1x128xf32> to vector<16x128xf32>
    %5 = arith.addf %2, %4 : vector<16x128xf32>
    %cst_5 = arith.constant 0.000000e+00 : f32
    %6 = vector.broadcast %cst_5 : f32 to vector<16x128xf32>
    %7 = arith.maximumf %5, %6 : vector<16x128xf32>
    %8 = arith.truncf %7 : vector<16x128xf32> to vector<16x128xbf16>
    %c0_6 = arith.constant 0 : index
    %c0_7 = arith.constant 0 : index
    %9 = vector.load %arg4[%c0_6, %c0_7] : memref<128x128xbf16, #tpu.memory_space<vmem>>, vector<128x128xbf16>
    %cst_8 = arith.constant dense<0.000000e+00> : vector<16x128xf32>
    %10 = tpu.matmul %8, %9, %cst_8 {dimension_numbers = #tpu.dot_dimension_numbers<[1], [0], [0], [1], [0, 0, 1, 1], [], []>} : vector<16x128xbf16>, vector<128x128xbf16>, vector<16x128xf32> -> vector<16x128xf32>
    %c0_9 = arith.constant 0 : index
    %c0_10 = arith.constant 0 : index
    %11 = vector.load %arg5[%c0_9, %c0_10] : memref<1x128xf32, #tpu.memory_space<vmem>>, vector<1x128xf32>
    %12 = vector.broadcast %11 : vector<1x128xf32> to vector<16x128xf32>
    %13 = arith.addf %10, %12 : vector<16x128xf32>
    %cst_11 = arith.constant 0.000000e+00 : f32
    %14 = vector.broadcast %cst_11 : f32 to vector<16x128xf32>
    %15 = arith.maximumf %13, %14 : vector<16x128xf32>
    %16 = arith.truncf %15 : vector<16x128xf32> to vector<16x128xbf16>
    %c0_12 = arith.constant 0 : index
    %c0_13 = arith.constant 0 : index
    %17 = vector.load %arg6[%c0_12, %c0_13] : memref<128x128xbf16, #tpu.memory_space<vmem>>, vector<128x128xbf16>
    %cst_14 = arith.constant dense<0.000000e+00> : vector<16x128xf32>
    %18 = tpu.matmul %16, %17, %cst_14 {dimension_numbers = #tpu.dot_dimension_numbers<[1], [0], [0], [1], [0, 0, 1, 1], [], []>} : vector<16x128xbf16>, vector<128x128xbf16>, vector<16x128xf32> -> vector<16x128xf32>
    %c0_15 = arith.constant 0 : index
    %c0_16 = arith.constant 0 : index
    %19 = vector.load %arg7[%c0_15, %c0_16] : memref<1x128xf32, #tpu.memory_space<vmem>>, vector<1x128xf32>
    %20 = vector.broadcast %19 : vector<1x128xf32> to vector<16x128xf32>
    %21 = arith.addf %18, %20 : vector<16x128xf32>
    %c0_17 = arith.constant 0 : index
    %c0_18 = arith.constant 0 : index
    %22 = vector.load %arg8[%c0_17, %c0_18] : memref<16x128xf32, #tpu.memory_space<vmem>>, vector<16x128xf32>
    tpu.vector_store %arg8[%c0_17, %c0_18], %21 {strides = array<i32>} : memref<16x128xf32, #tpu.memory_space<vmem>>, vector<16x128xf32>,
    return
  }
  func.func @transform_0(%arg0: i32) -> (i32, i32) {
    %c0_i32 = arith.constant 0 : i32
    %c0_i32_0 = arith.constant 0 : i32
    return %arg0, %c0_i32 : i32, i32
  }
  func.func @transform_1(%arg0: i32) -> (i32, i32) {
    %c0_i32 = arith.constant 0 : i32
    %c0_i32_0 = arith.constant 0 : i32
    %c0_i32_1 = arith.constant 0 : i32
    return %c0_i32, %c0_i32_0 : i32, i32
  }
  func.func @transform_2(%arg0: i32) -> (i32, i32) {
    %c0_i32 = arith.constant 0 : i32
    %c0_i32_0 = arith.constant 0 : i32
    %c0_i32_1 = arith.constant 0 : i32
    return %c0_i32, %c0_i32_0 : i32, i32
  }
  func.func @transform_3(%arg0: i32) -> (i32, i32) {
    %c0_i32 = arith.constant 0 : i32
    %c0_i32_0 = arith.constant 0 : i32
    %c0_i32_1 = arith.constant 0 : i32
    return %c0_i32, %c0_i32_0 : i32, i32
  }
  func.func @transform_4(%arg0: i32) -> (i32, i32) {
    %c0_i32 = arith.constant 0 : i32
    %c0_i32_0 = arith.constant 0 : i32
    %c0_i32_1 = arith.constant 0 : i32
    return %c0_i32, %c0_i32_0 : i32, i32
  }
  func.func @transform_5(%arg0: i32) -> (i32, i32) {
    %c0_i32 = arith.constant 0 : i32
    %c0_i32_0 = arith.constant 0 : i32
    %c0_i32_1 = arith.constant 0 : i32
    return %c0_i32, %c0_i32_0 : i32, i32
  }
  func.func @transform_6(%arg0: i32) -> (i32, i32) {
    %c0_i32 = arith.constant 0 : i32
    %c0_i32_0 = arith.constant 0 : i32
    %c0_i32_1 = arith.constant 0 : i32
    return %c0_i32, %c0_i32_0 : i32, i32
  }
  func.func @transform_7(%arg0: i32) -> (i32, i32) {
    %c0_i32 = arith.constant 0 : i32
    %c0_i32_0 = arith.constant 0 : i32
    return %arg0, %c0_i32 : i32, i32
  }
}

</mosaic_0001>

<bundles_post_ra>
// kernel: tpu_custom_call.1
= control target key start
LH: loop header
LB: loop body
LE: loop exit
PB: predicated region body
PF: predicated region fallthrough
CT: control target
= control target key end

     0   :  { %12 = vsyncpa [#allocation3], 0  ;;  %s830_s0 = inlined_call_operand.hbm [shape: bf16[8,128], index: 0, kind: input, shape index: {}]   ;;  %s831_s1 = inlined_call_operand.hbm [shape: bf16[128,128], index: 1, kind: input, shape index: {}]   ;;  %s832_s2 = inlined_call_operand.vmem [shape: f32[1,128], index: 2, kind: input, shape index: {}]   ;;  %s833_s3 = inlined_call_operand.hbm [shape: bf16[128,128], index: 3, kind: input, shape index: {}]   ;;  %s834_s4 = inlined_call_operand.vmem [shape: f32[1,128], index: 4, kind: input, shape index: {}]   ;;  %s835_s5 = inlined_call_operand.hbm [shape: bf16[128,128], index: 5, kind: input, shape index: {}]   ;;  %s836_s6 = inlined_call_operand.vmem [shape: f32[1,128], index: 6, kind: input, shape index: {}]   ;;  %s837_s7 = inlined_call_operand.hbm [shape: f32[8,128], index: 7, kind: output, shape index: {}]  }
   0x1   :  { %13 = vsyncpa [#allocation6], 0 }
   0x2   :  { %14 = vsyncpa [#allocation9], 0 }
   0x3   :  { %15 = vsyncpa [#allocation4], 0 }
   0x4   :  { %20 = vsyncadd [#allocation3], 64  ;;  %s713_s24 = smov [#allocation5]   ;;  %s714_s26 = smov [#allocation2]  }
   0x5   :  { %s33_s25 = sshll.u32 %s713_s24, 4  ;;  %s21_s27 = sshll.u32 %s714_s26, 4  ;;  %s34_s25 = int_to_ptr.vmem [resolvable:$true] %s33_s25  ;;  %s22_s27 = int_to_ptr.vmem [resolvable:$true] %s21_s27 }
   0x6   :  { %s613_s28 = scalar_lea.vmem %s34_s25, 1024  ;;  %p618_p1 = scmp.lt.s32.totalorder %s34_s25, %s34_s25 }
   0x7   :  { %p614_p0 = scmp.ne.s32.totalorder %s34_s25, %s613_s28  ;;  %p619_p2 = scmp.lt.s32.totalorder %s613_s28, %s613_s28 }
   0x9   :  { %p620_p3 = por %p619_p2, %p618_p1 }
   0xb   :  { %p621_p4 = pnand %p620_p3, %p614_p0 }
   0xd   :  { %624 = shalt.err (!%p621_p4)
}
   0xe   :  { %s715_s29 = smov 64   ;;  %s716_s30 = smov 4  }
   0xf   :  { %39 = dma.hbm_to_vmem [thread:$0]  %s831_s1, 1024, %s34_s25, [#allocation6], %s715_s29, %s715_s29, %s716_s30  }
  0x10   :  { %s633_s10 = scalar_lea.vmem %s22_s27, 64  ;;  %s637_s11 = scalar_lea.vmem %s22_s27, 128 }
  0x11   :  { %p634_p5 = scmp.ne.s32.totalorder %s22_s27, %s633_s10  ;;  %p638_p6 = scmp.lt.s32.totalorder %s22_s27, %s22_s27 }
  0x12   :  { %p639_p7 = scmp.lt.s32.totalorder %s637_s11, %s633_s10 }
  0x14   :  { %p640_p8 = por %p639_p7, %p638_p6 }
  0x16   :  { %p641_p9 = pnand %p640_p8, %p634_p5 }
  0x18   :  { %644 = shalt.err (!%p641_p9)
}
  0x19   :  { %27 = dma.hbm_to_vmem [thread:$0]  %s830_s0, 64, %s22_s27, [#allocation3], %s715_s29, %s715_s29, %s716_s30  }
  0x1a   :  { %s717_s14 = smov [#allocation7]   ;;  %s718_s16 = smov [#allocation8]  }
  0x1b   :  { %s47_s15 = sshll.u32 %s717_s14, 4  ;;  %s61_s17 = sshll.u32 %s718_s16, 4  ;;  %s48_s15 = int_to_ptr.vmem [resolvable:$true] %s47_s15  ;;  %s62_s17 = int_to_ptr.vmem [resolvable:$true] %s61_s17 }
  0x1c   :  { %s653_s1 = scalar_lea.vmem %s48_s15, 1024  ;;  %p658_p11 = scmp.lt.s32.totalorder %s48_s15, %s48_s15 }
  0x1d   :  { %p654_p10 = scmp.ne.s32.totalorder %s48_s15, %s653_s1  ;;  %p659_p12 = scmp.lt.s32.totalorder %s653_s1, %s653_s1 }
  0x1f   :  { %p660_p13 = por %p659_p12, %p658_p11 }
  0x21   :  { %p661_p0 = pnand %p660_p13, %p654_p10 }
  0x23   :  { %664 = shalt.err (!%p661_p0)
}
  0x24   :  { %53 = dma.hbm_to_vmem [thread:$0]  %s833_s3, 1024, %s48_s15, [#allocation6], %s715_s29, %s715_s29, %s716_s30  }
  0x25   :  { %s673_s0 = scalar_lea.vmem %s62_s17, 1024  ;;  %p678_p2 = scmp.lt.s32.totalorder %s62_s17, %s62_s17 }
  0x26   :  { %p674_p1 = scmp.ne.s32.totalorder %s62_s17, %s673_s0  ;;  %p679_p3 = scmp.lt.s32.totalorder %s673_s0, %s673_s0 }
  0x28   :  { %p680_p4 = por %p679_p3, %p678_p2 }
  0x2a   :  { %p681_p5 = pnand %p680_p4, %p674_p1 }
  0x2c   :  { %684 = shalt.err (!%p681_p5)
}
  0x2d   :  { %67 = dma.hbm_to_vmem [thread:$0]  %s835_s5, 1024, %s62_s17, [#allocation9], %s715_s29, %s715_s29, %s716_s30  }
  0x2e   :  { %705 = dma.done.wait [#allocation3], 128  }
  0x2f   :  { %706 = vsyncadd [#allocation3], 4294967168 }
  0x30   :  { %707 = dma.done.wait [#allocation6], 2048  }
  0x31   :  { %708 = vsyncadd [#allocation6], 4294965248 }
  0x32   :  { %709 = dma.done.wait [#allocation9], 1024  }
  0x33   :  { %710 = vsyncadd [#allocation9], 4294966272  ;;  %v719_v0 = vmov 0.0   ;;  %vm720_vm0 = vmmov 0   ;;  %v580_v1 = vld [vmem:[#allocation5 + $0x38] sm:$0xff]   ;;  %v581_v2 = vld [vmem:[#allocation5 + $0x30] sm:$0xff]  }
  0x34   :  { %509 = vmatprep.subr.bf16.mxu0 %v719_v0  ;;  %525 = vmatprep.mubr.msk.bf16.mxu0 %vm720_vm0, %v719_v0  ;;  %v582_v3 = vld [vmem:[#allocation5 + $0x28] sm:$0xff]   ;;  %v589_v4 = vld [vmem:[#allocation7 + $0x38] sm:$0xff]   ;;  %v583_v5 = vld [vmem:[#allocation5 + $0x20] sm:$0xff]  }
  0x35   :  { %529 = vmatprep.subr.bf16.mxu1 %v719_v0  ;;  %545 = vmatprep.mubr.msk.bf16.mxu1 %vm720_vm0, %v719_v0  ;;  %v590_v6 = vld [vmem:[#allocation7 + $0x30] sm:$0xff]   ;;  %v584_v7 = vld [vmem:[#allocation5 + $0x18] sm:$0xff]   ;;  %v591_v8 = vld [vmem:[#allocation7 + $0x28] sm:$0xff]  }
  0x36   :  { %510 = vmatpush3.bf16.msra.mxu0 %v580_v1  ;;  %530 = vmatpush3.bf16.msra.mxu1 %v589_v4  ;;  %v585_v9 = vld [vmem:[#allocation5 + $0x10] sm:$0xff]   ;;  %v592_v10 = vld [vmem:[#allocation7 + $0x20] sm:$0xff]   ;;  %v586_v11 = vld [vmem:[#allocation5 + $0x8] sm:$0xff]  }
  0x37   :  { %511 = vmatprep.subr.bf16.mxu0 %v719_v0  ;;  %531 = vmatprep.subr.bf16.mxu1 %v719_v0  ;;  %v593_v12 = vld [vmem:[#allocation7 + $0x18] sm:$0xff]   ;;  %v587_v13 = vld [vmem:[#allocation5] sm:$0xff]   ;;  %v594_v15 = vld [vmem:[#allocation7 + $0x10] sm:$0xff]  }
  0x38   :  { %v588_v14 = vld [vmem:[#allocation2] sm:$0xff]   ;;  %v595_v16 = vld [vmem:[#allocation7 + $0x8] sm:$0xff]   ;;  %v596_v17 = vld [vmem:[#allocation7] sm:$0xff]  }
  0x39   :  { %v597_v18 = vld [vmem:[#allocation8 + $0x38] sm:$0xff]   ;;  %v598_v19 = vld [vmem:[#allocation8 + $0x30] sm:$0xff]   ;;  %v599_v20 = vld [vmem:[#allocation8 + $0x28] sm:$0xff]  }
  0x3a   :  { %512 = vmatpush3.bf16.msra.mxu0 %v581_v2  ;;  %532 = vmatpush3.bf16.msra.mxu1 %v590_v6  ;;  %v600_v21 = vld [vmem:[#allocation8 + $0x20] sm:$0xff]   ;;  %v601_v22 = vld [vmem:[#allocation8 + $0x18] sm:$0xff]   ;;  %v602_v33 = vld [vmem:[#allocation8 + $0x10] sm:$0xff]  }
  0x3b   :  { %513 = vmatprep.subr.bf16.mxu0 %v719_v0  ;;  %533 = vmatprep.subr.bf16.mxu1 %v719_v0  ;;  %v454_v23 = vld [vmem:[%s832_s2] ss:$0 sm:$0xff]  ;;  %v603_v34 = vld [vmem:[#allocation8 + $0x8] sm:$0xff]   ;;  %v604_v35 = vld [vmem:[#allocation8] sm:$0xff]  }
  0x3c   :  { %v464_v36 = vld [vmem:[%s834_s4] ss:$0 sm:$0xff] }
  0x3d   :  { %v473_v46 = vld [vmem:[%s836_s6] ss:$0 sm:$0xff] }
  0x3e   :  { %514 = vmatpush3.bf16.msra.mxu0 %v582_v3  ;;  %534 = vmatpush3.bf16.msra.mxu1 %v591_v8 }
  0x3f   :  { %515 = vmatprep.subr.bf16.mxu0 %v719_v0  ;;  %535 = vmatprep.subr.bf16.mxu1 %v719_v0 }
  0x42   :  { %516 = vmatpush3.bf16.msra.mxu0 %v583_v5  ;;  %536 = vmatpush3.bf16.msra.mxu1 %v592_v10 }
  0x43   :  { %517 = vmatprep.subr.bf16.mxu0 %v719_v0  ;;  %537 = vmatprep.subr.bf16.mxu1 %v719_v0 }
  0x46   :  { %518 = vmatpush3.bf16.msra.mxu0 %v584_v7  ;;  %538 = vmatpush3.bf16.msra.mxu1 %v593_v12 }
  0x47   :  { %519 = vmatprep.subr.bf16.mxu0 %v719_v0  ;;  %539 = vmatprep.subr.bf16.mxu1 %v719_v0 }
  0x4a   :  { %520 = vmatpush3.bf16.msra.mxu0 %v585_v9  ;;  %540 = vmatpush3.bf16.msra.mxu1 %v594_v15 }
  0x4b   :  { %521 = vmatprep.subr.bf16.mxu0 %v719_v0  ;;  %541 = vmatprep.subr.bf16.mxu1 %v719_v0 }
  0x4e   :  { %522 = vmatpush3.bf16.msra.mxu0 %v586_v11  ;;  %542 = vmatpush3.bf16.msra.mxu1 %v595_v16 }
  0x4f   :  { %523 = vmatprep.subr.bf16.mxu0 %v719_v0  ;;  %543 = vmatprep.subr.bf16.mxu1 %v719_v0 }
  0x52   :  { %524 = vmatpush3.bf16.msra.mxu0 %v587_v13  ;;  %544 = vmatpush3.bf16.msra.mxu1 %v596_v17 }
  0x53   :  { %549 = vmatprep.subr.bf16.mxu0 %v719_v0 }
  0x55   :  { %526 = vmatmul.mubr.bf16.vlgmr.msra.gmra.mxu0 %v588_v14 }
  0x56   :  { %565 = vmatprep.mubr.msk.bf16.mxu0 %vm720_vm0, %v719_v0  ;;  %550 = vmatpush3.bf16.msra.mxu0 %v597_v18 }
  0x57   :  { %551 = vmatprep.subr.bf16.mxu0 %v719_v0 }
  0x5a   :  { %552 = vmatpush3.bf16.msra.mxu0 %v598_v19 }
  0x5b   :  { %553 = vmatprep.subr.bf16.mxu0 %v719_v0 }
  0x5e   :  { %554 = vmatpush3.bf16.msra.mxu0 %v599_v20 }
  0x5f   :  { %555 = vmatprep.subr.bf16.mxu0 %v719_v0 }
  0x62   :  { %556 = vmatpush3.bf16.msra.mxu0 %v600_v21 }
  0x63   :  { %557 = vmatprep.subr.bf16.mxu0 %v719_v0 }
  0x66   :  { %558 = vmatpush3.bf16.msra.mxu0 %v601_v22 }
  0x67   :  { %559 = vmatprep.subr.bf16.mxu0 %v719_v0 }
  0x6a   :  { %560 = vmatpush3.bf16.msra.mxu0 %v602_v33 }
  0x6b   :  { %561 = vmatprep.subr.bf16.mxu0 %v719_v0 }
  0x6e   :  { %562 = vmatpush3.bf16.msra.mxu0 %v603_v34 }
  0x6f   :  { %563 = vmatprep.subr.bf16.mxu0 %v719_v0 }
  0x72   :  { %564 = vmatpush3.bf16.msra.mxu0 %v604_v35 }
 0x115   :  { %v196_v24 = vpop.f32.mrf.mxu0 }
 0x116   :  { %v197_v26 = vadd.f32 %v454_v23, %v196_v24 }
 0x117   :  { %v527_v25 = vpop.f32.mrf.mxu0 }
 0x118   :  { %v203_v30 = vmax.f32 %v197_v26, 0.0 }
 0x119   :  { %v199_v27 = vpop.f32.mrf.mxu0 }
 0x11a   :  { %v200_v28 = vadd.f32 %v454_v23, %v199_v27 }
 0x11b   :  { %v528_v29 = vpop.f32.mrf.mxu0 }
 0x11c   :  { %v204_v31 = vmax.f32 %v200_v28, 0.0 }
 0x11e   :  { %v205_v32 = vpack.c.bf16 %v204_v31, %v203_v30 }
 0x120   :  { %546 = vmatmul.mubr.bf16.vlgmr.msra.gmra.mxu1 %v205_v32 }
 0x1e0   :  { %v311_v37 = vpop.f32.mrf.mxu1 }
 0x1e1   :  { %v312_v39 = vadd.f32 %v464_v36, %v311_v37 }
 0x1e2   :  { %v547_v38 = vpop.f32.mrf.mxu1 }
 0x1e3   :  { %v318_v43 = vmax.f32 %v312_v39, 0.0 }
 0x1e4   :  { %v314_v40 = vpop.f32.mrf.mxu1 }
 0x1e5   :  { %v315_v41 = vadd.f32 %v464_v36, %v314_v40 }
 0x1e6   :  { %v548_v42 = vpop.f32.mrf.mxu1 }
 0x1e7   :  { %v319_v44 = vmax.f32 %v315_v41, 0.0 }
 0x1e9   :  { %v320_v45 = vpack.c.bf16 %v319_v44, %v318_v43 }
 0x1eb   :  { %566 = vmatmul.mubr.bf16.vlgmr.msra.gmra.mxu0 %v320_v45 }
 0x2ab   :  { %v426_v47 = vpop.f32.mrf.mxu0 }
 0x2ac   :  { %v427_v48 = vadd.f32 %v473_v46, %v426_v47 }
 0x2ad   :  { %v567_v49 = vpop.f32.mrf.mxu0 }
 0x2ae   :  { %433 = vst [vmem:[#allocation10] sm:$0xff] %v427_v48 }
 0x2af   :  { %v429_v50 = vpop.f32.mrf.mxu0 }
 0x2b0   :  { %v430_v51 = vadd.f32 %v473_v46, %v429_v50 }
 0x2b1   :  { %v568_v52 = vpop.f32.mrf.mxu0 }
 0x2b2   :  { %434 = vst [vmem:[#allocation10 + $0x8] sm:$0xff] %v430_v51 }
 0x2b3   :  { %439 = vsyncadd [#allocation4], 128  ;;  %s721_s4 = smov [#allocation10]  }
 0x2b4   :  { %s440_s25 = sshll.u32 %s721_s4, 4  ;;  %s441_s25 = int_to_ptr.vmem [resolvable:$true] %s440_s25 }
 0x2b5   :  { %s685_s26 = scalar_lea.vmem %s441_s25, 128  ;;  %s689_s27 = scalar_lea.vmem %s441_s25, 256 }
 0x2b6   :  { %p686_p6 = scmp.ne.s32.totalorder %s441_s25, %s685_s26  ;;  %p690_p7 = scmp.lt.s32.totalorder %s441_s25, %s441_s25 }
 0x2b7   :  { %p691_p8 = scmp.lt.s32.totalorder %s689_s27, %s685_s26 }
 0x2b9   :  { %p692_p9 = por %p691_p8, %p690_p7 }
 0x2bb   :  { %p693_p10 = pnand %p692_p9, %p686_p6 }
 0x2bd   :  { %696 = shalt.err (!%p693_p10)
}
 0x2be   :  { %s722_s6 = smov 128   ;;  %s723_s28 = smov 8  }
 0x2bf   :  { %446 = dma.vmem_to_hbm [thread:$0]  %s441_s25, 128, %s837_s7, [#allocation4], %s722_s6, %s722_s6, %s723_s28  }
 0x2c0   :  { %711 = dma.done.wait [#allocation4], 256  }
 0x2c1   :  { %712 = vsyncadd [#allocation4], 4294967040 }
 0x2c2   :  { %450 = vsyncpa [#allocation3], 1 }
 0x2c3   :  { %451 = vsyncpa [#allocation6], 1 }
 0x2c4   :  { %452 = vsyncpa [#allocation9], 1 }
 0x2c5   :  { %453 = vsyncpa [#allocation4], 1 }

</bundles_post_ra>
